<compile_context>
chip_gen: v6e
topology: v6e:2x2x1
jax: 0.10.0
libtpu: 0.0.40
codegen_flags: <defaults>
</compile_context>

<pallas_src>
from functools import partial

import numpy as np
import jax
import jax.numpy as jnp
from jax import lax
from jax.experimental import pallas as pl
from jax.experimental.pallas import tpu as pltpu

_EPS = 1e-5


def _basic_block_kernel(x_ref, m_ref, w1_ref, b1_ref, w2_ref, b2_ref,
                        o_ref, stk_ref, *, W, Cin, Cmid):
    # x_ref  : (Cin,  B*HW)    B images, channel-major, flat H*W per image
    # m_ref  : (9,    B*HW)    0/1 validity mask per tap (row & col combined)
    # w1_ref : (Cmid, 9*Cin)   conv1, BN1 scale folded, col = (kh*3+kw)*Cin+c
    # b1_ref : (Cmid, 1)       folded BN1 shift
    # w2_ref : (Cout, 9*Cmid)  conv2, BN2 scale folded
    # b2_ref : (Cout, 1)       folded BN2 shift
    # o_ref  : (Cout, B*HW)    lane-dense output block
    # stk_ref: (9*max(Cin,Cmid), B*HW) VMEM im2col scratch
    bhw = x_ref.shape[-1]
    offs = tuple(dh * W + dw for dh in (-1, 0, 1) for dw in (-1, 0, 1))

    def conv3x3(src, w_ref, c):
        # Stack the 9 shifted + masked windows along the contraction axis,
        # then contract everything with a single MXU matmul (K = 9*c).
        for k, off in enumerate(offs):
            win = src if off == 0 else pltpu.roll(src, (-off) % bhw, axis=1)
            if k != 4:                          # centre tap is always valid
                win = win * m_ref[k:k + 1, :]
            stk_ref[c * k:c * (k + 1), :] = win
        return jnp.dot(w_ref[...], stk_ref[0:9 * c, :],
                       preferred_element_type=jnp.float32)

    x = x_ref[...]
    # conv1 + folded BN1 + ReLU (activation stays in registers, no VMEM trip).
    y1 = jnp.maximum(conv3x3(x, w1_ref, Cin) + b1_ref[...], 0.0)
    # TODO(synk): nn.Dropout(p=0.5) is eval-mode identity; training mode would
    # mask with pltpu.prng_random_bits and rescale by 2.
    # conv2 + folded BN2, residual add, ReLU.
    y2 = conv3x3(y1, w2_ref, Cmid) + b2_ref[...]
    o_ref[...] = jnp.maximum(y2 + x, 0.0).astype(o_ref.dtype)


def _pick_images_per_step(n, max_images=8):
    """Largest divisor of n that is <= max_images (amortizes grid overhead)."""
    b = min(n, max_images)
    while n % b:
        b -= 1
    return b


def basic_block_pallas(x_nchw, p, *, images_per_step=None):
    """x_nchw: (N, Cin, H, W) float32, PyTorch layout."""
    N, Cin, H, W = x_nchw.shape
    Cmid = p["w1"].shape[0]
    Cout = p["w2"].shape[0]
    assert Cout == Cin, "residual add requires in_planes == planes"
    HW = H * W

    # Images per grid step.  Fewer, larger steps amortize the ~0.35us/step
    # grid overhead (v5e/v6e run the grid as a serial loop); on v7x pass
    # images_per_step = N // 2 when N >= 4 so both TensorCores get work.
    B = images_per_step or _pick_images_per_step(N)
    assert N % B == 0
    grid_n = N // B
    bhw = B * HW
    assert grid_n == 1 or bhw % 128 == 0, "lane block must be 128-aligned"

    # Fold eval-mode BatchNorm into per-channel scale/shift; the scale goes
    # into the conv weights, only the additive shift stays in-kernel.
    s1 = p["g1"] / jnp.sqrt(p["v1"] + _EPS)
    b1 = (p["b1"] - p["m1"] * s1).reshape(Cmid, 1)
    s2 = p["g2"] / jnp.sqrt(p["v2"] + _EPS)
    b2 = (p["b2"] - p["m2"] * s2).reshape(Cout, 1)

    # torch conv weight (Cout, Cin, 3, 3) -> tap-stacked (Cout, 9*Cin) so each
    # conv is ONE matmul; column index = (kh*3 + kw)*Cin + cin.
    w1 = jnp.transpose(p["w1"] * s1[:, None, None, None],
                       (0, 2, 3, 1)).reshape(Cmid, 9 * Cin)
    w2 = jnp.transpose(p["w2"] * s2[:, None, None, None],
                       (0, 2, 3, 1)).reshape(Cout, 9 * Cmid)

    # Channel-major lane-dense layout (Cin, N*HW).  No zero padding in HBM;
    # the wrapper transpose is pure layout plumbing outside the kernel.
    x_cm = jnp.transpose(x_nchw.reshape(N, Cin, HW), (1, 0, 2)).reshape(Cin, N * HW)

    # Per-tap validity masks (host constants): tap (dh, dw) is valid at flat
    # position q iff (h+dh, w+dw) stays inside the image.  Roll wrap-around
    # (rows, image boundaries, array ends) only hits masked positions.
    q = np.arange(HW, dtype=np.int64)
    hh, ww = q // W, q % W
    masks = np.stack([((hh + dh >= 0) & (hh + dh < H) &
                       (ww + dw >= 0) & (ww + dw < W))
                      for dh in (-1, 0, 1) for dw in (-1, 0, 1)])
    masks = jnp.asarray(np.tile(masks.astype(np.float32), (1, B)))   # (9, B*HW)

    kernel = partial(_basic_block_kernel, W=W, Cin=Cin, Cmid=Cmid)
    out_cm = pl.pallas_call(
        kernel,
        out_shape=jax.ShapeDtypeStruct((Cout, N * HW), x_nchw.dtype),
        grid=(grid_n,),
        in_specs=[
            pl.BlockSpec((Cin, bhw), lambda g: (0, g)),
            pl.BlockSpec((9, bhw), lambda g: (0, 0)),
            pl.BlockSpec((Cmid, 9 * Cin), lambda g: (0, 0)),
            pl.BlockSpec((Cmid, 1), lambda g: (0, 0)),
            pl.BlockSpec((Cout, 9 * Cmid), lambda g: (0, 0)),
            pl.BlockSpec((Cout, 1), lambda g: (0, 0)),
        ],
        out_specs=pl.BlockSpec((Cout, bhw), lambda g: (0, g)),
        scratch_shapes=[pltpu.VMEM((9 * max(Cin, Cmid), bhw), jnp.float32)],
        compiler_params=pltpu.CompilerParams(
            dimension_semantics=("parallel",)),
    )(x_cm, masks, w1, b1, w2, b2)

    return jnp.transpose(out_cm.reshape(Cout, N, HW),
                         (1, 0, 2)).reshape(N, Cout, H, W)


def init_params(key, in_planes, planes):
    mid = planes
    ks = jax.random.split(key, 10)
    w1 = jax.random.normal(ks[0], (mid, in_planes, 3, 3), jnp.float32) / jnp.sqrt(in_planes * 9.0)
    w2 = jax.random.normal(ks[1], (planes, mid, 3, 3), jnp.float32) / jnp.sqrt(mid * 9.0)
    g1 = 1.0 + 0.05 * jax.random.normal(ks[2], (mid,), jnp.float32)
    b1 = 0.02 * jax.random.normal(ks[3], (mid,), jnp.float32)
    m1 = 0.01 * jax.random.normal(ks[4], (mid,), jnp.float32)
    v1 = 1.0 + 0.1 * jnp.abs(jax.random.normal(ks[5], (mid,), jnp.float32))
    g2 = 1.0 + 0.05 * jax.random.normal(ks[6], (planes,), jnp.float32)
    b2 = 0.02 * jax.random.normal(ks[7], (planes,), jnp.float32)
    m2 = 0.01 * jax.random.normal(ks[8], (planes,), jnp.float32)
    v2 = 1.0 + 0.1 * jnp.abs(jax.random.normal(ks[9], (planes,), jnp.float32))
    return dict(w1=w1, g1=g1, b1=b1, m1=m1, v1=v1,
                w2=w2, g2=g2, b2=b2, m2=m2, v2=v2)


def reference_forward(x_nchw, p):
    """Pure-JAX reference (eval-mode BN, identity dropout)."""
    x = jnp.transpose(x_nchw, (0, 2, 3, 1))

    def conv(inp, w):
        w_hwio = jnp.transpose(w, (2, 3, 1, 0))
        return lax.conv_general_dilated(
            inp, w_hwio, window_strides=(1, 1), padding=((1, 1), (1, 1)),
            dimension_numbers=("NHWC", "HWIO", "NHWC"))

    def bn(inp, g, b, m, v):
        return (inp - m) / jnp.sqrt(v + _EPS) * g + b

    out = jax.nn.relu(bn(conv(x, p["w1"]), p["g1"], p["b1"], p["m1"], p["v1"]))
    out = bn(conv(out, p["w2"]), p["g2"], p["b2"], p["m2"], p["v2"])
    out = jax.nn.relu(out + x)
    return jnp.transpose(out, (0, 3, 1, 2))


if __name__ == "__main__":
    key = jax.random.PRNGKey(0)
    kx, kp = jax.random.split(key)
    in_planes = planes = 4          # residual add requires in_planes == planes
    N, H, W = 2, 16, 16
    x = jax.random.normal(kx, (N, in_planes, H, W), jnp.float32)
    params = init_params(kp, in_planes, planes)

    out = jax.block_until_ready(basic_block_pallas(x, params))

    ref = reference_forward(x, params)
    assert out.shape == ref.shape == (N, planes, H, W)
    max_err = float(jnp.max(jnp.abs(out - ref)))
    if max_err > 1e-3:
        raise AssertionError(f"Pallas kernel mismatch vs reference: max|err| = {max_err}")
    print("KERNEL_OK")
</pallas_src>

<mosaic_0001>
module attributes {stable_mosaic.version = 11 : i64} {
  func.func @_basic_block_kernel(%arg0: i32, %arg1: memref<4x512xf32, #tpu.memory_space<vmem>>, %arg2: memref<9x512xf32, #tpu.memory_space<vmem>>, %arg3: memref<4x36xf32, #tpu.memory_space<vmem>>, %arg4: memref<4x1xf32, #tpu.memory_space<vmem>>, %arg5: memref<4x36xf32, #tpu.memory_space<vmem>>, %arg6: memref<4x1xf32, #tpu.memory_space<vmem>>, %arg7: memref<4x512xf32, #tpu.memory_space<vmem>>, %arg8: memref<36x512xf32, #tpu.memory_space<vmem>>) attributes {dimension_semantics = [#tpu.dimension_semantics<parallel>], iteration_bounds = array<i64: 1>, scalar_prefetch = 0 : i64, scratch_operands = 1 : i64, tpu.core_type = #tpu.core_type<tc>, window_params = [{transform_indices = @transform_0, window_bounds = array<i64: 4, 512>}, {pipeline_mode = #tpu.pipeline_mode<synchronous>, transform_indices = @transform_1, window_bounds = array<i64: 9, 512>}, {pipeline_mode = #tpu.pipeline_mode<synchronous>, transform_indices = @transform_2, window_bounds = array<i64: 4, 36>}, {pipeline_mode = #tpu.pipeline_mode<synchronous>, transform_indices = @transform_3, window_bounds = array<i64: 4, 1>}, {pipeline_mode = #tpu.pipeline_mode<synchronous>, transform_indices = @transform_4, window_bounds = array<i64: 4, 36>}, {pipeline_mode = #tpu.pipeline_mode<synchronous>, transform_indices = @transform_5, window_bounds = array<i64: 4, 1>}, {transform_indices = @transform_6, window_bounds = array<i64: 4, 512>}]} {
    %c0 = arith.constant 0 : index
    %c0_0 = arith.constant 0 : index
    %0 = vector.load %arg1[%c0, %c0_0] : memref<4x512xf32, #tpu.memory_space<vmem>>, vector<4x512xf32>
    %c17_i32 = arith.constant 17 : i32
    %1 = tpu.dynamic_rotate %0 by %c17_i32 dim 1 : vector<4x512xf32>, i32 -> vector<4x512xf32>
    %c0_1 = arith.constant 0 : index
    %c0_2 = arith.constant 0 : index
    %2 = vector.load %arg2[%c0_1, %c0_2] : memref<9x512xf32, #tpu.memory_space<vmem>>, vector<1x512xf32>
    %3 = vector.broadcast %2 : vector<1x512xf32> to vector<4x512xf32>
    %4 = arith.mulf %1, %3 : vector<4x512xf32>
    %c0_3 = arith.constant 0 : index
    %c0_4 = arith.constant 0 : index
    %5 = vector.load %arg8[%c0_3, %c0_4] : memref<36x512xf32, #tpu.memory_space<vmem>>, vector<4x512xf32>
    tpu.vector_store %arg8[%c0_3, %c0_4], %4 {strides = array<i32>} : memref<36x512xf32, #tpu.memory_space<vmem>>, vector<4x512xf32>,
    %c16_i32 = arith.constant 16 : i32
    %6 = tpu.dynamic_rotate %0 by %c16_i32 dim 1 : vector<4x512xf32>, i32 -> vector<4x512xf32>
    %c1 = arith.constant 1 : index
    %c0_5 = arith.constant 0 : index
    %7 = vector.load %arg2[%c1, %c0_5] : memref<9x512xf32, #tpu.memory_space<vmem>>, vector<1x512xf32>
    %8 = vector.broadcast %7 : vector<1x512xf32> to vector<4x512xf32>
    %9 = arith.mulf %6, %8 : vector<4x512xf32>
    %c4 = arith.constant 4 : index
    %c0_6 = arith.constant 0 : index
    %10 = vector.load %arg8[%c4, %c0_6] : memref<36x512xf32, #tpu.memory_space<vmem>>, vector<4x512xf32>
    tpu.vector_store %arg8[%c4, %c0_6], %9 {strides = array<i32>} : memref<36x512xf32, #tpu.memory_space<vmem>>, vector<4x512xf32>,
    %c15_i32 = arith.constant 15 : i32
    %11 = tpu.dynamic_rotate %0 by %c15_i32 dim 1 : vector<4x512xf32>, i32 -> vector<4x512xf32>
    %c2 = arith.constant 2 : index
    %c0_7 = arith.constant 0 : index
    %12 = vector.load %arg2[%c2, %c0_7] : memref<9x512xf32, #tpu.memory_space<vmem>>, vector<1x512xf32>
    %13 = vector.broadcast %12 : vector<1x512xf32> to vector<4x512xf32>
    %14 = arith.mulf %11, %13 : vector<4x512xf32>
    %c8 = arith.constant 8 : index
    %c0_8 = arith.constant 0 : index
    %15 = vector.load %arg8[%c8, %c0_8] : memref<36x512xf32, #tpu.memory_space<vmem>>, vector<4x512xf32>
    tpu.vector_store %arg8[%c8, %c0_8], %14 {strides = array<i32>} : memref<36x512xf32, #tpu.memory_space<vmem>>, vector<4x512xf32>,
    %c1_i32 = arith.constant 1 : i32
    %16 = tpu.dynamic_rotate %0 by %c1_i32 dim 1 : vector<4x512xf32>, i32 -> vector<4x512xf32>
    %c3 = arith.constant 3 : index
    %c0_9 = arith.constant 0 : index
    %17 = vector.load %arg2[%c3, %c0_9] : memref<9x512xf32, #tpu.memory_space<vmem>>, vector<1x512xf32>
    %18 = vector.broadcast %17 : vector<1x512xf32> to vector<4x512xf32>
    %19 = arith.mulf %16, %18 : vector<4x512xf32>
    %c12 = arith.constant 12 : index
    %c0_10 = arith.constant 0 : index
    %20 = vector.load %arg8[%c12, %c0_10] : memref<36x512xf32, #tpu.memory_space<vmem>>, vector<4x512xf32>
    tpu.vector_store %arg8[%c12, %c0_10], %19 {strides = array<i32>} : memref<36x512xf32, #tpu.memory_space<vmem>>, vector<4x512xf32>,
    %c16 = arith.constant 16 : index
    %c0_11 = arith.constant 0 : index
    %21 = vector.load %arg8[%c16, %c0_11] : memref<36x512xf32, #tpu.memory_space<vmem>>, vector<4x512xf32>
    tpu.vector_store %arg8[%c16, %c0_11], %0 {strides = array<i32>} : memref<36x512xf32, #tpu.memory_space<vmem>>, vector<4x512xf32>,
    %c511_i32 = arith.constant 511 : i32
    %22 = tpu.dynamic_rotate %0 by %c511_i32 dim 1 : vector<4x512xf32>, i32 -> vector<4x512xf32>
    %c5 = arith.constant 5 : index
    %c0_12 = arith.constant 0 : index
    %23 = vector.load %arg2[%c5, %c0_12] : memref<9x512xf32, #tpu.memory_space<vmem>>, vector<1x512xf32>
    %24 = vector.broadcast %23 : vector<1x512xf32> to vector<4x512xf32>
    %25 = arith.mulf %22, %24 : vector<4x512xf32>
    %c20 = arith.constant 20 : index
    %c0_13 = arith.constant 0 : index
    %26 = vector.load %arg8[%c20, %c0_13] : memref<36x512xf32, #tpu.memory_space<vmem>>, vector<4x512xf32>
    tpu.vector_store %arg8[%c20, %c0_13], %25 {strides = array<i32>} : memref<36x512xf32, #tpu.memory_space<vmem>>, vector<4x512xf32>,
    %c497_i32 = arith.constant 497 : i32
    %27 = tpu.dynamic_rotate %0 by %c497_i32 dim 1 : vector<4x512xf32>, i32 -> vector<4x512xf32>
    %c6 = arith.constant 6 : index
    %c0_14 = arith.constant 0 : index
    %28 = vector.load %arg2[%c6, %c0_14] : memref<9x512xf32, #tpu.memory_space<vmem>>, vector<1x512xf32>
    %29 = vector.broadcast %28 : vector<1x512xf32> to vector<4x512xf32>
    %30 = arith.mulf %27, %29 : vector<4x512xf32>
    %c24 = arith.constant 24 : index
    %c0_15 = arith.constant 0 : index
    %31 = vector.load %arg8[%c24, %c0_15] : memref<36x512xf32, #tpu.memory_space<vmem>>, vector<4x512xf32>
    tpu.vector_store %arg8[%c24, %c0_15], %30 {strides = array<i32>} : memref<36x512xf32, #tpu.memory_space<vmem>>, vector<4x512xf32>,
    %c496_i32 = arith.constant 496 : i32
    %32 = tpu.dynamic_rotate %0 by %c496_i32 dim 1 : vector<4x512xf32>, i32 -> vector<4x512xf32>
    %c7 = arith.constant 7 : index
    %c0_16 = arith.constant 0 : index
    %33 = vector.load %arg2[%c7, %c0_16] : memref<9x512xf32, #tpu.memory_space<vmem>>, vector<1x512xf32>
    %34 = vector.broadcast %33 : vector<1x512xf32> to vector<4x512xf32>
    %35 = arith.mulf %32, %34 : vector<4x512xf32>
    %c28 = arith.constant 28 : index
    %c0_17 = arith.constant 0 : index
    %36 = vector.load %arg8[%c28, %c0_17] : memref<36x512xf32, #tpu.memory_space<vmem>>, vector<4x512xf32>
    tpu.vector_store %arg8[%c28, %c0_17], %35 {strides = array<i32>} : memref<36x512xf32, #tpu.memory_space<vmem>>, vector<4x512xf32>,
    %c495_i32 = arith.constant 495 : i32
    %37 = tpu.dynamic_rotate %0 by %c495_i32 dim 1 : vector<4x512xf32>, i32 -> vector<4x512xf32>
    %c8_18 = arith.constant 8 : index
    %c0_19 = arith.constant 0 : index
    %38 = vector.load %arg2[%c8_18, %c0_19] : memref<9x512xf32, #tpu.memory_space<vmem>>, vector<1x512xf32>
    %39 = vector.broadcast %38 : vector<1x512xf32> to vector<4x512xf32>
    %40 = arith.mulf %37, %39 : vector<4x512xf32>
    %c32 = arith.constant 32 : index
    %c0_20 = arith.constant 0 : index
    %41 = vector.load %arg8[%c32, %c0_20] : memref<36x512xf32, #tpu.memory_space<vmem>>, vector<4x512xf32>
    tpu.vector_store %arg8[%c32, %c0_20], %40 {strides = array<i32>} : memref<36x512xf32, #tpu.memory_space<vmem>>, vector<4x512xf32>,
    %c0_21 = arith.constant 0 : index
    %c0_22 = arith.constant 0 : index
    %42 = vector.load %arg3[%c0_21, %c0_22] : memref<4x36xf32, #tpu.memory_space<vmem>>, vector<4x36xf32>
    %c0_23 = arith.constant 0 : index
    %c0_24 = arith.constant 0 : index
    %43 = vector.load %arg8[%c0_23, %c0_24] : memref<36x512xf32, #tpu.memory_space<vmem>>, vector<36x512xf32>
    %cst = arith.constant dense<0.000000e+00> : vector<4x512xf32>
    %44 = tpu.matmul %42, %43, %cst {dimension_numbers = #tpu.dot_dimension_numbers<[1], [0], [0], [1], [0, 0, 1, 1], [], []>} : vector<4x36xf32>, vector<36x512xf32>, vector<4x512xf32> -> vector<4x512xf32>
    %c0_25 = arith.constant 0 : index
    %c0_26 = arith.constant 0 : index
    %45 = vector.load %arg4[%c0_25, %c0_26] : memref<4x1xf32, #tpu.memory_space<vmem>>, vector<4x1xf32>
    %46 = vector.broadcast %45 : vector<4x1xf32> to vector<4x512xf32>
    %47 = arith.addf %44, %46 : vector<4x512xf32>
    %cst_27 = arith.constant 0.000000e+00 : f32
    %48 = vector.broadcast %cst_27 : f32 to vector<4x512xf32>
    %49 = arith.maximumf %47, %48 : vector<4x512xf32>
    %c17_i32_28 = arith.constant 17 : i32
    %50 = tpu.dynamic_rotate %49 by %c17_i32_28 dim 1 : vector<4x512xf32>, i32 -> vector<4x512xf32>
    %c0_29 = arith.constant 0 : index
    %c0_30 = arith.constant 0 : index
    %51 = vector.load %arg2[%c0_29, %c0_30] : memref<9x512xf32, #tpu.memory_space<vmem>>, vector<1x512xf32>
    %52 = vector.broadcast %51 : vector<1x512xf32> to vector<4x512xf32>
    %53 = arith.mulf %50, %52 : vector<4x512xf32>
    %c0_31 = arith.constant 0 : index
    %c0_32 = arith.constant 0 : index
    %54 = vector.load %arg8[%c0_31, %c0_32] : memref<36x512xf32, #tpu.memory_space<vmem>>, vector<4x512xf32>
    tpu.vector_store %arg8[%c0_31, %c0_32], %53 {strides = array<i32>} : memref<36x512xf32, #tpu.memory_space<vmem>>, vector<4x512xf32>,
    %c16_i32_33 = arith.constant 16 : i32
    %55 = tpu.dynamic_rotate %49 by %c16_i32_33 dim 1 : vector<4x512xf32>, i32 -> vector<4x512xf32>
    %c1_34 = arith.constant 1 : index
    %c0_35 = arith.constant 0 : index
    %56 = vector.load %arg2[%c1_34, %c0_35] : memref<9x512xf32, #tpu.memory_space<vmem>>, vector<1x512xf32>
    %57 = vector.broadcast %56 : vector<1x512xf32> to vector<4x512xf32>
    %58 = arith.mulf %55, %57 : vector<4x512xf32>
    %c4_36 = arith.constant 4 : index
    %c0_37 = arith.constant 0 : index
    %59 = vector.load %arg8[%c4_36, %c0_37] : memref<36x512xf32, #tpu.memory_space<vmem>>, vector<4x512xf32>
    tpu.vector_store %arg8[%c4_36, %c0_37], %58 {strides = array<i32>} : memref<36x512xf32, #tpu.memory_space<vmem>>, vector<4x512xf32>,
    %c15_i32_38 = arith.constant 15 : i32
    %60 = tpu.dynamic_rotate %49 by %c15_i32_38 dim 1 : vector<4x512xf32>, i32 -> vector<4x512xf32>
    %c2_39 = arith.constant 2 : index
    %c0_40 = arith.constant 0 : index
    %61 = vector.load %arg2[%c2_39, %c0_40] : memref<9x512xf32, #tpu.memory_space<vmem>>, vector<1x512xf32>
    %62 = vector.broadcast %61 : vector<1x512xf32> to vector<4x512xf32>
    %63 = arith.mulf %60, %62 : vector<4x512xf32>
    %c8_41 = arith.constant 8 : index
    %c0_42 = arith.constant 0 : index
    %64 = vector.load %arg8[%c8_41, %c0_42] : memref<36x512xf32, #tpu.memory_space<vmem>>, vector<4x512xf32>
    tpu.vector_store %arg8[%c8_41, %c0_42], %63 {strides = array<i32>} : memref<36x512xf32, #tpu.memory_space<vmem>>, vector<4x512xf32>,
    %c1_i32_43 = arith.constant 1 : i32
    %65 = tpu.dynamic_rotate %49 by %c1_i32_43 dim 1 : vector<4x512xf32>, i32 -> vector<4x512xf32>
    %c3_44 = arith.constant 3 : index
    %c0_45 = arith.constant 0 : index
    %66 = vector.load %arg2[%c3_44, %c0_45] : memref<9x512xf32, #tpu.memory_space<vmem>>, vector<1x512xf32>
    %67 = vector.broadcast %66 : vector<1x512xf32> to vector<4x512xf32>
    %68 = arith.mulf %65, %67 : vector<4x512xf32>
    %c12_46 = arith.constant 12 : index
    %c0_47 = arith.constant 0 : index
    %69 = vector.load %arg8[%c12_46, %c0_47] : memref<36x512xf32, #tpu.memory_space<vmem>>, vector<4x512xf32>
    tpu.vector_store %arg8[%c12_46, %c0_47], %68 {strides = array<i32>} : memref<36x512xf32, #tpu.memory_space<vmem>>, vector<4x512xf32>,
    %c16_48 = arith.constant 16 : index
    %c0_49 = arith.constant 0 : index
    %70 = vector.load %arg8[%c16_48, %c0_49] : memref<36x512xf32, #tpu.memory_space<vmem>>, vector<4x512xf32>
    tpu.vector_store %arg8[%c16_48, %c0_49], %49 {strides = array<i32>} : memref<36x512xf32, #tpu.memory_space<vmem>>, vector<4x512xf32>,
    %c511_i32_50 = arith.constant 511 : i32
    %71 = tpu.dynamic_rotate %49 by %c511_i32_50 dim 1 : vector<4x512xf32>, i32 -> vector<4x512xf32>
    %c5_51 = arith.constant 5 : index
    %c0_52 = arith.constant 0 : index
    %72 = vector.load %arg2[%c5_51, %c0_52] : memref<9x512xf32, #tpu.memory_space<vmem>>, vector<1x512xf32>
    %73 = vector.broadcast %72 : vector<1x512xf32> to vector<4x512xf32>
    %74 = arith.mulf %71, %73 : vector<4x512xf32>
    %c20_53 = arith.constant 20 : index
    %c0_54 = arith.constant 0 : index
    %75 = vector.load %arg8[%c20_53, %c0_54] : memref<36x512xf32, #tpu.memory_space<vmem>>, vector<4x512xf32>
    tpu.vector_store %arg8[%c20_53, %c0_54], %74 {strides = array<i32>} : memref<36x512xf32, #tpu.memory_space<vmem>>, vector<4x512xf32>,
    %c497_i32_55 = arith.constant 497 : i32
    %76 = tpu.dynamic_rotate %49 by %c497_i32_55 dim 1 : vector<4x512xf32>, i32 -> vector<4x512xf32>
    %c6_56 = arith.constant 6 : index
    %c0_57 = arith.constant 0 : index
    %77 = vector.load %arg2[%c6_56, %c0_57] : memref<9x512xf32, #tpu.memory_space<vmem>>, vector<1x512xf32>
    %78 = vector.broadcast %77 : vector<1x512xf32> to vector<4x512xf32>
    %79 = arith.mulf %76, %78 : vector<4x512xf32>
    %c24_58 = arith.constant 24 : index
    %c0_59 = arith.constant 0 : index
    %80 = vector.load %arg8[%c24_58, %c0_59] : memref<36x512xf32, #tpu.memory_space<vmem>>, vector<4x512xf32>
    tpu.vector_store %arg8[%c24_58, %c0_59], %79 {strides = array<i32>} : memref<36x512xf32, #tpu.memory_space<vmem>>, vector<4x512xf32>,
    %c496_i32_60 = arith.constant 496 : i32
    %81 = tpu.dynamic_rotate %49 by %c496_i32_60 dim 1 : vector<4x512xf32>, i32 -> vector<4x512xf32>
    %c7_61 = arith.constant 7 : index
    %c0_62 = arith.constant 0 : index
    %82 = vector.load %arg2[%c7_61, %c0_62] : memref<9x512xf32, #tpu.memory_space<vmem>>, vector<1x512xf32>
    %83 = vector.broadcast %82 : vector<1x512xf32> to vector<4x512xf32>
    %84 = arith.mulf %81, %83 : vector<4x512xf32>
    %c28_63 = arith.constant 28 : index
    %c0_64 = arith.constant 0 : index
    %85 = vector.load %arg8[%c28_63, %c0_64] : memref<36x512xf32, #tpu.memory_space<vmem>>, vector<4x512xf32>
    tpu.vector_store %arg8[%c28_63, %c0_64], %84 {strides = array<i32>} : memref<36x512xf32, #tpu.memory_space<vmem>>, vector<4x512xf32>,
    %c495_i32_65 = arith.constant 495 : i32
    %86 = tpu.dynamic_rotate %49 by %c495_i32_65 dim 1 : vector<4x512xf32>, i32 -> vector<4x512xf32>
    %c8_66 = arith.constant 8 : index
    %c0_67 = arith.constant 0 : index
    %87 = vector.load %arg2[%c8_66, %c0_67] : memref<9x512xf32, #tpu.memory_space<vmem>>, vector<1x512xf32>
    %88 = vector.broadcast %87 : vector<1x512xf32> to vector<4x512xf32>
    %89 = arith.mulf %86, %88 : vector<4x512xf32>
    %c32_68 = arith.constant 32 : index
    %c0_69 = arith.constant 0 : index
    %90 = vector.load %arg8[%c32_68, %c0_69] : memref<36x512xf32, #tpu.memory_space<vmem>>, vector<4x512xf32>
    tpu.vector_store %arg8[%c32_68, %c0_69], %89 {strides = array<i32>} : memref<36x512xf32, #tpu.memory_space<vmem>>, vector<4x512xf32>,
    %c0_70 = arith.constant 0 : index
    %c0_71 = arith.constant 0 : index
    %91 = vector.load %arg5[%c0_70, %c0_71] : memref<4x36xf32, #tpu.memory_space<vmem>>, vector<4x36xf32>
    %c0_72 = arith.constant 0 : index
    %c0_73 = arith.constant 0 : index
    %92 = vector.load %arg8[%c0_72, %c0_73] : memref<36x512xf32, #tpu.memory_space<vmem>>, vector<36x512xf32>
    %cst_74 = arith.constant dense<0.000000e+00> : vector<4x512xf32>
    %93 = tpu.matmul %91, %92, %cst_74 {dimension_numbers = #tpu.dot_dimension_numbers<[1], [0], [0], [1], [0, 0, 1, 1], [], []>} : vector<4x36xf32>, vector<36x512xf32>, vector<4x512xf32> -> vector<4x512xf32>
    %c0_75 = arith.constant 0 : index
    %c0_76 = arith.constant 0 : index
    %94 = vector.load %arg6[%c0_75, %c0_76] : memref<4x1xf32, #tpu.memory_space<vmem>>, vector<4x1xf32>
    %95 = vector.broadcast %94 : vector<4x1xf32> to vector<4x512xf32>
    %96 = arith.addf %93, %95 : vector<4x512xf32>
    %97 = arith.addf %96, %0 : vector<4x512xf32>
    %cst_77 = arith.constant 0.000000e+00 : f32
    %98 = vector.broadcast %cst_77 : f32 to vector<4x512xf32>
    %99 = arith.maximumf %97, %98 : vector<4x512xf32>
    %c0_78 = arith.constant 0 : index
    %c0_79 = arith.constant 0 : index
    %100 = vector.load %arg7[%c0_78, %c0_79] : memref<4x512xf32, #tpu.memory_space<vmem>>, vector<4x512xf32>
    tpu.vector_store %arg7[%c0_78, %c0_79], %99 {strides = array<i32>} : memref<4x512xf32, #tpu.memory_space<vmem>>, vector<4x512xf32>,
    return
  }
  func.func @transform_0(%arg0: i32) -> (i32, i32) {
    %c0_i32 = arith.constant 0 : i32
    %c0_i32_0 = arith.constant 0 : i32
    return %c0_i32, %arg0 : i32, i32
  }
  func.func @transform_1(%arg0: i32) -> (i32, i32) {
    %c0_i32 = arith.constant 0 : i32
    %c0_i32_0 = arith.constant 0 : i32
    %c0_i32_1 = arith.constant 0 : i32
    return %c0_i32, %c0_i32_0 : i32, i32
  }
  func.func @transform_2(%arg0: i32) -> (i32, i32) {
    %c0_i32 = arith.constant 0 : i32
    %c0_i32_0 = arith.constant 0 : i32
    %c0_i32_1 = arith.constant 0 : i32
    return %c0_i32, %c0_i32_0 : i32, i32
  }
  func.func @transform_3(%arg0: i32) -> (i32, i32) {
    %c0_i32 = arith.constant 0 : i32
    %c0_i32_0 = arith.constant 0 : i32
    %c0_i32_1 = arith.constant 0 : i32
    return %c0_i32, %c0_i32_0 : i32, i32
  }
  func.func @transform_4(%arg0: i32) -> (i32, i32) {
    %c0_i32 = arith.constant 0 : i32
    %c0_i32_0 = arith.constant 0 : i32
    %c0_i32_1 = arith.constant 0 : i32
    return %c0_i32, %c0_i32_0 : i32, i32
  }
  func.func @transform_5(%arg0: i32) -> (i32, i32) {
    %c0_i32 = arith.constant 0 : i32
    %c0_i32_0 = arith.constant 0 : i32
    %c0_i32_1 = arith.constant 0 : i32
    return %c0_i32, %c0_i32_0 : i32, i32
  }
  func.func @transform_6(%arg0: i32) -> (i32, i32) {
    %c0_i32 = arith.constant 0 : i32
    %c0_i32_0 = arith.constant 0 : i32
    return %c0_i32, %arg0 : i32, i32
  }
}

</mosaic_0001>

<bundles_post_ra>
// kernel: tpu_custom_call.1
= control target key start
LH: loop header
LB: loop body
LE: loop exit
PB: predicated region body
PF: predicated region fallthrough
CT: control target
= control target key end

     0   :  { %11 = vsyncpa [#allocation4], 0  ;;  %s1768_s0 = inlined_call_operand.hbm [shape: f32[4,512], index: 0, kind: input, shape index: {}]   ;;  %s1769_s1 = inlined_call_operand.hbm [shape: f32[9,512], index: 1, kind: input, shape index: {}]   ;;  %s1770_s2 = inlined_call_operand.vmem [shape: f32[4,36], index: 2, kind: input, shape index: {}]   ;;  %s1771_s3 = inlined_call_operand.vmem [shape: f32[4,1], index: 3, kind: input, shape index: {}]   ;;  %s1772_s4 = inlined_call_operand.vmem [shape: f32[4,36], index: 4, kind: input, shape index: {}]   ;;  %s1773_s5 = inlined_call_operand.vmem [shape: f32[4,1], index: 5, kind: input, shape index: {}]   ;;  %s1774_s6 = inlined_call_operand.hbm [shape: f32[4,512], index: 6, kind: output, shape index: {}]  }
   0x1   :  { %12 = vsyncpa [#allocation7], 0 }
   0x2   :  { %13 = vsyncpa [#allocation5], 0  ;;  %s1355_s21 = smov [#allocation3]   ;;  %s1356_s23 = smov [#allocation6]  }
   0x3   :  { %s20_s22 = sshll.u32 %s1355_s21, 4  ;;  %s29_s24 = sshll.u32 %s1356_s23, 4  ;;  %s21_s22 = int_to_ptr.vmem [resolvable:$true] %s20_s22  ;;  %s30_s24 = int_to_ptr.vmem [resolvable:$true] %s29_s24 }
   0x4   :  { %s1297_s25 = scalar_lea.vmem %s21_s22, 256  ;;  %p1302_p1 = scmp.lt.s32.totalorder %s21_s22, %s21_s22 }
   0x5   :  { %p1298_p0 = scmp.ne.s32.totalorder %s21_s22, %s1297_s25  ;;  %p1303_p2 = scmp.lt.s32.totalorder %s1297_s25, %s1297_s25 }
   0x7   :  { %p1304_p3 = por %p1303_p2, %p1302_p1 }
   0x9   :  { %p1305_p4 = pnand %p1304_p3, %p1298_p0 }
   0xb   :  { %1308 = shalt.err (!%p1305_p4)
}
   0xc   :  { %23 = dma.hbm_to_vmem [thread:$0]  %s1768_s0, 256, %s21_s22, [#allocation4]  }
   0xd   :  { %s1317_s28 = scalar_lea.vmem %s30_s24, 1024  ;;  %p1322_p6 = scmp.lt.s32.totalorder %s30_s24, %s30_s24 }
   0xe   :  { %p1318_p5 = scmp.ne.s32.totalorder %s30_s24, %s1317_s28  ;;  %p1323_p7 = scmp.lt.s32.totalorder %s1317_s28, %s1317_s28 }
  0x10   :  { %p1324_p8 = por %p1323_p7, %p1322_p6 }
  0x12   :  { %p1325_p9 = pnand %p1324_p8, %p1318_p5 }
  0x14   :  { %1328 = shalt.err (!%p1325_p9)
}
  0x15   :  { %s1357_s29 = smov 512   ;;  %s1358_s30 = smov 32  }
  0x16   :  { %35 = dma.hbm_to_vmem [thread:$0]  %s1769_s1, 1024, %s30_s24, [#allocation7], %s1357_s29, %s1357_s29, %s1358_s30  }
  0x17   :  { %1349 = dma.done.wait [#allocation4], 256  }
  0x18   :  { %1350 = vsyncadd [#allocation4], 4294967040 }
  0x19   :  { %1351 = dma.done.wait [#allocation7], 1024  }
  0x1a   :  { %1352 = vsyncadd [#allocation7], 4294966272  ;;  %v1411_v0 = vld [vmem:[#allocation3 + $0x8] sm:$0xff]  ;;  %v1413_v1 = vld [vmem:[#allocation3] sm:$0xff]  ;;  %s1359_s0 = smov 112   ;;  %s1360_s1 = smov 111   ;;  %v66_v7 = vlaneseq }
  0x1b   :  { %367 = vrot.lane.b32.xlu1 %v1411_v0, %s1359_s0  ;;  %261 = vst [vmem:[#allocation2 + $0x28] sm:$0xf] %v1411_v0  ;;  %363 = vrot.lane.b32.xlu0 %v1413_v1, %s1359_s0  ;;  %259 = vst [vmem:[#allocation2 + $0x8] sm:$0xf] %v1413_v1  ;;  %v1423_v2 = vcombine.high %v1411_v0, %v1411_v0  ;;  %v1427_v3 = vcombine.high %v1413_v1, %v1413_v1  ;;  %s1361_s9 = smov 127   ;;  %s1362_s10 = smov 113  }
  0x1c   :  { %s1363_s11 = smov 1   ;;  %s1364_s12 = smov 16   ;;  %v1367_v4 = vmov 0.0   ;;  %v1368_v5 = vmov 0   ;;  %v484_v6 = vld [vmem:[%s1771_s3] sm:$0xf] }
  0x1d   :  { %262 = vst [vmem:[#allocation2 + $0x40] sm:$0xf] %v1423_v2  ;;  %260 = vst [vmem:[#allocation2 + $0x88] sm:$0xf] %v1427_v3  ;;  %s1365_s13 = smov 15   ;;  %s1366_s14 = smov 17   ;;  %571 = vmatprep.mubr.f32.mxu0 %v1367_v4  ;;  %642 = vmatprep.mubr.f32.mxu1 %v1367_v4 }
  0x1e   :  { %1286 = vset.pattern.permute.xlu0 %v1368_v5  ;;  %v76_v8 = vshrl.u32 %v66_v7, 7  ;;  %v1496_v9 = vand.u32 127, %v66_v7  ;;  %v377_v12 = vld [vmem:[#allocation6 + $0x7] ss:$8 sm:$0xf]  ;;  %vm494_vm3 = vcmask 1043456  }
  0x1f   :  { %369 = vrot.lane.b32.xlu1 %v1423_v2, %s1359_s0  ;;  %419 = vrot.lane.b32.xlu0 %v1413_v1, %s1360_s1  ;;  %v433_v19 = vld [vmem:[#allocation6 + $0x20] ss:$8 sm:$0xf]  ;;  %v277_v42 = vld [vmem:[#allocation6 + $0x5] ss:$8 sm:$0xf] }
  0x20   :  { %v1498_v10 = vsub.s32 2, %v76_v8  ;;  %v1500_v11 = vsub.s32 3, %v76_v8  ;;  %v1502_v15 = vsub.s32 0, %v76_v8  ;;  %v1504_v16 = vsub.s32 1, %v76_v8 }
  0x21   :  { %vm371_vm0 = vcmp.lt.s32.totalorder %v1496_v9, 112  ;;  %vm427_vm1 = vcmp.lt.s32.totalorder %v1496_v9, 111  ;;  %vm271_vm2 = vcmp.lt.s32.totalorder %v1496_v9, 127  ;;  %v333_v61 = vld [vmem:[#allocation6 + $0x6] ss:$8 sm:$0xf] }
  0x22   :  { %v390_v17 = vrot.slane %v377_v12, %v1498_v10  ;;  %v394_v18 = vrot.slane %v377_v12, %v1500_v11  ;;  %v438_v24 = vrot.slane %v433_v19, %v1502_v15  ;;  %v382_v27 = vrot.slane %v377_v12, %v1502_v15 }
  0x23   :  { %421 = vrot.lane.b32.xlu1 %v1427_v3, %s1360_s1  ;;  %365 = vrot.lane.b32.xlu0 %v1427_v3, %s1359_s0  ;;  %v386_v28 = vrot.slane %v377_v12, %v1504_v16  ;;  %v450_v33 = vrot.slane %v433_v19, %v1500_v11  ;;  %v442_v37 = vrot.slane %v433_v19, %v1504_v16  ;;  %vm327_vm4 = vcmp.lt.s32.totalorder %v1496_v9, 113 }
  0x24   :  { %v446_v41 = vrot.slane %v433_v19, %v1498_v10  ;;  %v282_v53 = vrot.slane %v277_v42, %v1502_v15  ;;  %v294_v58 = vrot.slane %v277_v42, %v1500_v11  ;;  %v286_v59 = vrot.slane %v277_v42, %v1504_v16 }
  0x25   :  { %v290_v60 = vrot.slane %v277_v42, %v1498_v10  ;;  %vm211_vm5 = vcmp.lt.s32.totalorder %v1496_v9, 1  ;;  %vm111_vm6 = vcmp.lt.s32.totalorder %v1496_v9, 16  ;;  %vm167_vm7 = vcmp.lt.s32.totalorder %v1496_v9, 15 }
  0x26   :  { %vm68_vm8 = vcmp.lt.s32.totalorder %v1496_v9, 17  ;;  %vm490_vm9 = vcmask 293888  }
  0x27   :  { %425 = vrot.lane.b32.xlu1 %v1423_v2, %s1360_s1  ;;  %423 = vrot.lane.b32.xlu0 %v1411_v0, %s1360_s1 }
  0x2b   :  { %265 = vrot.lane.b32.xlu1 %v1427_v3, %s1361_s9  ;;  %263 = vrot.lane.b32.xlu0 %v1413_v1, %s1361_s9 }
  0x2f   :  { %269 = vrot.lane.b32.xlu1 %v1423_v2, %s1361_s9  ;;  %267 = vrot.lane.b32.xlu0 %v1411_v0, %s1361_s9 }
  0x33   :  { %321 = vrot.lane.b32.xlu1 %v1427_v3, %s1362_s10  ;;  %319 = vrot.lane.b32.xlu0 %v1413_v1, %s1362_s10 }
  0x37   :  { %325 = vrot.lane.b32.xlu1 %v1423_v2, %s1362_s10  ;;  %323 = vrot.lane.b32.xlu0 %v1411_v0, %s1362_s10 }
  0x3b   :  { %205 = vrot.lane.b32.xlu1 %v1427_v3, %s1363_s11  ;;  %203 = vrot.lane.b32.xlu0 %v1413_v1, %s1363_s11 }
  0x3f   :  { %209 = vrot.lane.b32.xlu1 %v1423_v2, %s1363_s11  ;;  %207 = vrot.lane.b32.xlu0 %v1411_v0, %s1363_s11 }
  0x43   :  { %105 = vrot.lane.b32.xlu1 %v1427_v3, %s1364_s12  ;;  %103 = vrot.lane.b32.xlu0 %v1413_v1, %s1364_s12 }
  0x47   :  { %109 = vrot.lane.b32.xlu1 %v1423_v2, %s1364_s12  ;;  %107 = vrot.lane.b32.xlu0 %v1411_v0, %s1364_s12 }
  0x4b   :  { %161 = vrot.lane.b32.xlu1 %v1427_v3, %s1365_s13  ;;  %159 = vrot.lane.b32.xlu0 %v1413_v1, %s1365_s13 }
  0x4f   :  { %165 = vrot.lane.b32.xlu1 %v1423_v2, %s1365_s13  ;;  %163 = vrot.lane.b32.xlu0 %v1411_v0, %s1365_s13 }
  0x53   :  { %60 = vrot.lane.b32.xlu1 %v1427_v3, %s1366_s14  ;;  %58 = vrot.lane.b32.xlu0 %v1413_v1, %s1366_s14 }
  0x57   :  { %64 = vrot.lane.b32.xlu1 %v1423_v2, %s1366_s14  ;;  %62 = vrot.lane.b32.xlu0 %v1411_v0, %s1366_s14 }
  0x5b   :  { %487 = vperm.xlu0 %1286, %v484_v6  }
  0x8d   :  { %v368_v13 = vpop.permute.xlu1 %367  ;;  %v364_v14 = vpop.permute.xlu0 %363 }
  0x91   :  { %v370_v20 = vpop.permute.xlu1 %369  ;;  %v420_v21 = vpop.permute.xlu0 %419 }
  0x92   :  { %v372_v22 = vsel %vm371_vm0, %v368_v13, %v370_v20  ;;  %v375_v23 = vsel %vm371_vm0, %v370_v20, %v364_v14 }
  0x93   :  { %v401_v25 = vmul.f32 %v390_v17, %v372_v22  ;;  %v402_v26 = vmul.f32 %v394_v18, %v375_v23  ;;  %v338_v17 = vrot.slane %v333_v61, %v1502_v15 }
  0x95   :  { %v409_v29 = vrot.slane %v401_v25, 4  ;;  %v410_v30 = vrot.slane %v402_v26, 4  ;;  %v422_v31 = vpop.permute.xlu1 %421  ;;  %v366_v32 = vpop.permute.xlu0 %365 }
  0x96   :  { %v430_v34 = vsel %vm427_vm1, %v420_v21, %v422_v31  ;;  %v373_v35 = vsel %vm371_vm0, %v366_v32, %v368_v13  ;;  %v374_v36 = vsel %vm371_vm0, %v364_v14, %v366_v32  ;;  %v217_v32 = vld [vmem:[#allocation6 + $0x3] ss:$8 sm:$0xf] }
  0x97   :  { %417 = vst [vmem:[#allocation2 + $0x98] sm:$0xf0] %v409_v29  ;;  %418 = vst [vmem:[#allocation2 + $0x60] sm:$0xf0] %v410_v30  ;;  %v455_v38 = vmul.f32 %v438_v24, %v430_v34  ;;  %v399_v39 = vmul.f32 %v382_v27, %v374_v36  ;;  %v400_v40 = vmul.f32 %v386_v28, %v373_v35 }
  0x98   :  { %v350_v29 = vrot.slane %v333_v61, %v1500_v11  ;;  %v342_v30 = vrot.slane %v333_v61, %v1504_v16 }
  0x99   :  { %459 = vst [vmem:[#allocation2 + $0x20] sm:$0xf] %v455_v38  ;;  %v407_v43 = vrot.slane %v399_v39, 4  ;;  %v408_v44 = vrot.slane %v400_v40, 4  ;;  %v426_v45 = vpop.permute.xlu1 %425  ;;  %v424_v46 = vpop.permute.xlu0 %423 }
  0x9a   :  { %v431_v47 = vsel %vm427_vm1, %v426_v45, %v420_v21  ;;  %v428_v48 = vsel %vm427_vm1, %v424_v46, %v426_v45  ;;  %v429_v49 = vsel %vm427_vm1, %v422_v31, %v424_v46  ;;  %v346_v31 = vrot.slane %v333_v61, %v1498_v10 }
  0x9b   :  { %415 = vst [vmem:[#allocation2 + $0x58] sm:$0xf0] %v407_v43  ;;  %416 = vst [vmem:[#allocation2 + $0x10] sm:$0xf0] %v408_v44  ;;  %v458_v50 = vmul.f32 %v450_v33, %v431_v47  ;;  %v456_v51 = vmul.f32 %v442_v37, %v429_v49  ;;  %v457_v52 = vmul.f32 %v446_v41, %v428_v48 }
  0x9c   :  { %v226_v41 = vrot.slane %v217_v32, %v1504_v16  ;;  %v222_v46 = vrot.slane %v217_v32, %v1502_v15  ;;  %v230_v47 = vrot.slane %v217_v32, %v1498_v10  ;;  %v234_v48 = vrot.slane %v217_v32, %v1500_v11  ;;  %v117_v49 = vld [vmem:[#allocation6 + $0x1] ss:$8 sm:$0xf] }
  0x9d   :  { %462 = vst [vmem:[#allocation2 + $0x90] sm:$0xf] %v458_v50  ;;  %460 = vst [vmem:[#allocation2 + $0x48] sm:$0xf] %v456_v51  ;;  %v266_v54 = vpop.permute.xlu1 %265  ;;  %v264_v55 = vpop.permute.xlu0 %263 }
  0x9e   :  { %461 = vst [vmem:[#allocation2 + $0x70] sm:$0xf] %v457_v52  ;;  %v274_v56 = vsel %vm271_vm2, %v264_v55, %v266_v54 }
  0x9f   :  { %v299_v57 = vmul.f32 %v282_v53, %v274_v56 }
  0xa0   :  { %v480_v26 = vld [vmem:[#allocation2 + $0x20] sm:$0xf] }
  0xa1   :  { %v307_v62 = vrot.slane %v299_v57, 4  ;;  %v270_v63 = vpop.permute.xlu1 %269  ;;  %v268_v5 = vpop.permute.xlu0 %267 }
  0xa2   :  { %v275_v6 = vsel %vm271_vm2, %v270_v63, %v264_v55  ;;  %v272_v7 = vsel %vm271_vm2, %v268_v5, %v270_v63  ;;  %v273_v8 = vsel %vm271_vm2, %v266_v54, %v268_v5 }
  0xa3   :  { %315 = vst [vmem:[#allocation2 + $0x8] sm:$0xf0] %v307_v62  ;;  %v302_v12 = vmul.f32 %v294_v58, %v275_v6  ;;  %v300_v13 = vmul.f32 %v286_v59, %v273_v8  ;;  %v301_v14 = vmul.f32 %v290_v60, %v272_v7  ;;  %v126_v59 = vrot.slane %v117_v49, %v1504_v16 }
  0xa4   :  { %v483_v18 = vld [vmem:[#allocation2 + $0x90] sm:$0xf]  ;;  %v481_v19 = vld [vmem:[#allocation2 + $0x48] sm:$0xf] }
  0xa5   :  { %v482_v20 = vld [vmem:[#allocation2 + $0x70] sm:$0xf]  ;;  %v310_v21 = vrot.slane %v302_v12, 4  ;;  %v308_v22 = vrot.slane %v300_v13, 4  ;;  %v309_v23 = vrot.slane %v301_v14, 4  ;;  %1262 = vmatprep.subr.msk.mxu1 %vm494_vm3, %v483_v18  ;;  %v322_v24 = vpop.permute.xlu1 %321  ;;  %1259 = vmatprep.subr.msk.mxu0 %vm494_vm3, %v481_v19  ;;  %v320_v25 = vpop.permute.xlu0 %319  ;;  %v122_v18 = vrot.slane %v117_v49, %v1502_v15 }
  0xa6   :  { %v330_v27 = vsel %vm327_vm4, %v320_v25, %v322_v24  ;;  %1260 = vmatpush1.msk.msra.mxu0 %vm494_vm3, %v480_v26  ;;  %1263 = vmatpush1.msk.msra.mxu1 %vm494_vm3, %v482_v20 }
  0xa7   :  { %318 = vst [vmem:[#allocation2 + $0x40] sm:$0xf0] %v310_v21  ;;  %316 = vst [vmem:[#allocation2 + $0x88] sm:$0xf0] %v308_v22  ;;  %v355_v28 = vmul.f32 %v338_v17, %v330_v27  ;;  %v130_v22 = vrot.slane %v117_v49, %v1498_v10 }
  0xa8   :  { %317 = vst [vmem:[#allocation2 + $0x28] sm:$0xf0] %v309_v23  ;;  %v134_v23 = vrot.slane %v117_v49, %v1500_v11 }
  0xa9   :  { %359 = vst [vmem:[#allocation2 + $0x58] sm:$0xf] %v355_v28  ;;  %v326_v33 = vpop.permute.xlu1 %325  ;;  %v324_v34 = vpop.permute.xlu0 %323 }
  0xaa   :  { %v331_v35 = vsel %vm327_vm4, %v326_v33, %v320_v25  ;;  %v328_v36 = vsel %vm327_vm4, %v324_v34, %v326_v33  ;;  %v329_v37 = vsel %vm327_vm4, %v322_v24, %v324_v34  ;;  %v472_v20 = vld [vmem:[#allocation2 + $0x8] sm:$0xff] }
  0xab   :  { %v358_v38 = vmul.f32 %v350_v29, %v331_v35  ;;  %v356_v39 = vmul.f32 %v342_v30, %v329_v37  ;;  %v357_v40 = vmul.f32 %v346_v31, %v328_v36  ;;  %v173_v24 = vld [vmem:[#allocation6 + $0x2] ss:$8 sm:$0xf] }
  0xac   :  { %v182_v34 = vrot.slane %v173_v24, %v1504_v16 }
  0xad   :  { %362 = vst [vmem:[#allocation2 + $0x60] sm:$0xf] %v358_v38  ;;  %360 = vst [vmem:[#allocation2 + $0x10] sm:$0xf] %v356_v39  ;;  %v206_v42 = vpop.permute.xlu1 %205  ;;  %v204_v43 = vpop.permute.xlu0 %203 }
  0xae   :  { %361 = vst [vmem:[#allocation2 + $0x98] sm:$0xf] %v357_v40  ;;  %v214_v44 = vsel %vm211_vm5, %v204_v43, %v206_v42  ;;  %v473_v14 = vld [vmem:[#allocation2 + $0x88] sm:$0xff]  ;;  %v475_v17 = vld [vmem:[#allocation2 + $0x40] sm:$0xff] }
  0xaf   :  { %v240_v45 = vmul.f32 %v226_v41, %v214_v44  ;;  %v474_v21 = vld [vmem:[#allocation2 + $0x28] sm:$0xff]  ;;  %v190_v44 = vrot.slane %v173_v24, %v1500_v11 }
  0xb0   :  { %v476_v12 = vld [vmem:[#allocation2 + $0x58] sm:$0xff] }
  0xb1   :  { %v248_v50 = vrot.slane %v240_v45, 4  ;;  %v210_v51 = vpop.permute.xlu1 %209  ;;  %v208_v52 = vpop.permute.xlu0 %207  ;;  %v73_v45 = vld [vmem:[#allocation6] ss:$8 sm:$0xf] }
  0xb2   :  { %v215_v53 = vsel %vm211_vm5, %v210_v51, %v204_v43  ;;  %v212_v54 = vsel %vm211_vm5, %v208_v52, %v210_v51  ;;  %v213_v55 = vsel %vm211_vm5, %v206_v42, %v208_v52  ;;  %v178_v42 = vrot.slane %v173_v24, %v1502_v15 }
  0xb3   :  { %256 = vst [vmem:[#allocation2 + $0x68] sm:$0xf0] %v248_v50  ;;  %v239_v56 = vmul.f32 %v222_v46, %v215_v53  ;;  %v241_v57 = vmul.f32 %v230_v47, %v213_v55  ;;  %v242_v58 = vmul.f32 %v234_v48, %v212_v54  ;;  %v186_v43 = vrot.slane %v173_v24, %v1498_v10 }
  0xb4   :  { %v477_v60 = vld [vmem:[#allocation2 + $0x10] sm:$0xff]  ;;  %v479_v61 = vld [vmem:[#allocation2 + $0x60] sm:$0xff]  ;;  %v82_v54 = vrot.slane %v73_v45, %v1504_v16 }
  0xb5   :  { %v478_v62 = vld [vmem:[#allocation2 + $0x98] sm:$0xff]  ;;  %v247_v63 = vrot.slane %v239_v56, 4  ;;  %v249_v5 = vrot.slane %v241_v57, 4  ;;  %v250_v6 = vrot.slane %v242_v58, 4  ;;  %v106_v7 = vpop.permute.xlu1 %105  ;;  %531 = vmatprep.subr.mxu0 %v477_v60  ;;  %602 = vmatprep.subr.mxu1 %v479_v61  ;;  %v104_v8 = vpop.permute.xlu0 %103  ;;  %v86_v60 = vrot.slane %v73_v45, %v1498_v10 }
  0xb6   :  { %v114_v13 = vsel %vm111_vm6, %v104_v8, %v106_v7  ;;  %532 = vmatpush1.msra.mxu0 %v476_v12  ;;  %603 = vmatpush1.msra.mxu1 %v478_v62  ;;  %v90_v61 = vrot.slane %v73_v45, %v1500_v11 }
  0xb7   :  { %255 = vst [vmem:[#allocation2 + $0x30] sm:$0xf0] %v247_v63  ;;  %257 = vst [vmem:[#allocation2 + $0x78] sm:$0xf0] %v249_v5  ;;  %v140_v19 = vmul.f32 %v126_v59, %v114_v13  ;;  %533 = vmatprep.subr.mxu0 %v473_v14  ;;  %604 = vmatprep.subr.mxu1 %v475_v17  ;;  %v78_v59 = vrot.slane %v73_v45, %v1502_v15 }
  0xb8   :  { %258 = vst [vmem:[#allocation2 + $0x80] sm:$0xf0] %v250_v6  ;;  %534 = vmatpush1.msra.mxu0 %v472_v20  ;;  %605 = vmatpush1.msra.mxu1 %v474_v21  ;;  %v463_v21 = vld [vmem:[%s1770_s2] sm:$0xf] }
  0xb9   :  { %v148_v25 = vrot.slane %v140_v19, 4  ;;  %v110_v26 = vpop.permute.xlu1 %109  ;;  %v108_v27 = vpop.permute.xlu0 %107 }
  0xba   :  { %v115_v28 = vsel %vm111_vm6, %v110_v26, %v104_v8  ;;  %v112_v29 = vsel %vm111_vm6, %v108_v27, %v110_v26  ;;  %v113_v30 = vsel %vm111_vm6, %v106_v7, %v108_v27 }
  0xbb   :  { %156 = vst [vmem:[#allocation2 + $0x38] sm:$0xf0] %v148_v25  ;;  %v139_v31 = vmul.f32 %v122_v18, %v115_v28  ;;  %v141_v32 = vmul.f32 %v130_v22, %v113_v30  ;;  %v142_v33 = vmul.f32 %v134_v23, %v112_v29 }
  0xbd   :  { %v147_v35 = vrot.slane %v139_v31, 4  ;;  %v149_v36 = vrot.slane %v141_v32, 4  ;;  %v150_v37 = vrot.slane %v142_v33, 4  ;;  %v162_v38 = vpop.permute.xlu1 %161  ;;  %v160_v39 = vpop.permute.xlu0 %159 }
  0xbe   :  { %v170_v40 = vsel %vm167_vm7, %v160_v39, %v162_v38 }
  0xbf   :  { %155 = vst [vmem:[#allocation2] sm:$0xf0] %v147_v35  ;;  %157 = vst [vmem:[#allocation2 + $0x50] sm:$0xf0] %v149_v36  ;;  %v196_v41 = vmul.f32 %v182_v34, %v170_v40 }
  0xc0   :  { %158 = vst [vmem:[#allocation2 + $0x18] sm:$0xf0] %v150_v37 }
  0xc1   :  { %200 = vst [vmem:[#allocation2 + $0x68] sm:$0xf] %v196_v41  ;;  %v166_v46 = vpop.permute.xlu1 %165  ;;  %v164_v47 = vpop.permute.xlu0 %163 }
  0xc2   :  { %v171_v48 = vsel %vm167_vm7, %v166_v46, %v160_v39  ;;  %v168_v49 = vsel %vm167_vm7, %v164_v47, %v166_v46  ;;  %v169_v50 = vsel %vm167_vm7, %v162_v38, %v164_v47  ;;  %v957_v38 = vld [vmem:[#allocation6 + $0x7] ss:$8 sm:$0xf] }
  0xc3   :  { %v195_v51 = vmul.f32 %v178_v42, %v171_v48  ;;  %v197_v52 = vmul.f32 %v186_v43, %v169_v50  ;;  %v198_v53 = vmul.f32 %v190_v44, %v168_v49  ;;  %v962_v41 = vrot.slane %v957_v38, %v1502_v15 }
  0xc4   :  { %v966_v42 = vrot.slane %v957_v38, %v1504_v16  ;;  %v970_v49 = vrot.slane %v957_v38, %v1498_v10  ;;  %v974_v50 = vrot.slane %v957_v38, %v1500_v11 }
  0xc5   :  { %199 = vst [vmem:[#allocation2 + $0x30] sm:$0xf] %v195_v51  ;;  %201 = vst [vmem:[#allocation2 + $0x78] sm:$0xf] %v197_v52  ;;  %v61_v55 = vpop.permute.xlu1 %60  ;;  %v59_v56 = vpop.permute.xlu0 %58 }
  0xc6   :  { %202 = vst [vmem:[#allocation2 + $0x80] sm:$0xf] %v198_v53  ;;  %v71_v57 = vsel %vm68_vm8, %v59_v56, %v61_v55  ;;  %v1011_v51 = vld [vmem:[#allocation6 + $0x20] ss:$8 sm:$0xf] }
  0xc7   :  { %v96_v58 = vmul.f32 %v82_v54, %v71_v57 }
  0xc8   :  { %v469_v62 = vld [vmem:[#allocation2 + $0x68] sm:$0xff] }
  0xc9   :  { %100 = vst [vmem:[#allocation2 + $0x38] sm:$0xf] %v96_v58  ;;  %v65_v63 = vpop.permute.xlu1 %64  ;;  %v63_v5 = vpop.permute.xlu0 %62  ;;  %535 = vmatprep.subr.mxu0 %v469_v62 }
  0xca   :  { %v72_v6 = vsel %vm68_vm8, %v65_v63, %v59_v56  ;;  %v69_v7 = vsel %vm68_vm8, %v63_v5, %v65_v63  ;;  %v70_v8 = vsel %vm68_vm8, %v61_v55, %v63_v5 }
  0xcb   :  { %v95_v12 = vmul.f32 %v78_v59, %v72_v6  ;;  %v97_v13 = vmul.f32 %v86_v60, %v70_v8  ;;  %v98_v14 = vmul.f32 %v90_v61, %v69_v7  ;;  %v1016_v60 = vrot.slane %v1011_v51, %v1502_v15 }
  0xcc   :  { %v468_v17 = vld [vmem:[#allocation2 + $0x30] sm:$0xff]  ;;  %v470_v19 = vld [vmem:[#allocation2 + $0x78] sm:$0xff]  ;;  %v1020_v61 = vrot.slane %v1011_v51, %v1504_v16 }
  0xcd   :  { %v471_v18 = vld [vmem:[#allocation2 + $0x80] sm:$0xff]  ;;  %99 = vst [vmem:[#allocation2] sm:$0xf] %v95_v12  ;;  %101 = vst [vmem:[#allocation2 + $0x50] sm:$0xf] %v97_v13  ;;  %536 = vmatpush1.msra.mxu0 %v468_v17  ;;  %v1028_v17 = vrot.slane %v1011_v51, %v1500_v11 }
  0xce   :  { %102 = vst [vmem:[#allocation2 + $0x18] sm:$0xf] %v98_v14  ;;  %606 = vmatprep.subr.mxu1 %v471_v18  ;;  %v1024_v14 = vrot.slane %v1011_v51, %v1498_v10  ;;  %v861_v18 = vld [vmem:[#allocation6 + $0x5] ss:$8 sm:$0xf] }
  0xcf   :  { %607 = vmatpush1.msra.mxu1 %v470_v19 }
  0xd0   :  { %v465_v20 = vld [vmem:[#allocation2 + $0x38] sm:$0xff] }
  0xd1   :  { %537 = vmatprep.subr.mxu0 %v465_v20 }
  0xd4   :  { %v464_v22 = vld [vmem:[#allocation2] sm:$0xff]  ;;  %v466_v24 = vld [vmem:[#allocation2 + $0x50] sm:$0xff] }
  0xd5   :  { %v467_v23 = vld [vmem:[#allocation2 + $0x18] sm:$0xff]  ;;  %538 = vmatpush1.msra.mxu0 %v464_v22 }
  0xd6   :  { %608 = vmatprep.subr.mxu1 %v467_v23  ;;  %1261 = vmatmul.mubr.msk.f32.vlgmr.msra.gmra.mxu0 %vm490_vm9, %v463_v21  ;;  %v488_v25 = vpop.permute.xlu0 %487 }
  0xd7   :  { %609 = vmatpush1.msra.mxu1 %v466_v24  ;;  %1147 = vmatprep.mubr.f32.mxu0 %v1367_v4 }
  0xd8   :  { %1264 = vmatmul.mubr.msk.f32.vlgmr.msra.gmra.mxu1 %vm490_vm9, %v463_v21 }
  0xd9   :  { %1218 = vmatprep.mubr.f32.mxu1 %v1367_v4  ;;  %v1062_v4 = vld [vmem:[%s1773_s5] sm:$0xf] }
 0x196   :  { %v573_v26 = vpop.f32.mrf.mxu0 }
 0x197   :  { %v574_v27 = vadd.f32 %v573_v26, %v488_v25  ;;  %v870_v26 = vrot.slane %v861_v18, %v1504_v16 }
 0x198   :  { %v644_v28 = vpop.f32.mrf.mxu1  ;;  %v575_v30 = vpop.f32.mrf.mxu0 }
 0x199   :  { %v645_v29 = vadd.f32 %v644_v28, %v488_v25  ;;  %v649_v31 = vmax.f32 %v574_v27, 0.0  ;;  %v576_v32 = vadd.f32 %v575_v30, %v488_v25 }
 0x19a   :  { %v646_v33 = vpop.f32.mrf.mxu1 }
 0x19b   :  { %v651_v34 = vmax.f32 %v645_v29, 0.0  ;;  %v647_v35 = vadd.f32 %v646_v33, %v488_v25  ;;  %845 = vst [vmem:[#allocation2 + $0x8] sm:$0xf] %v649_v31  ;;  %v650_v36 = vmax.f32 %v576_v32, 0.0  ;;  %945 = vrot.lane.b32.xlu1 %v649_v31, %s1359_s0  ;;  %v866_v25 = vrot.slane %v861_v18, %v1502_v15 }
 0x19c   :  { %v874_v33 = vrot.slane %v861_v18, %v1498_v10 }
 0x19d   :  { %847 = vst [vmem:[#allocation2 + $0x28] sm:$0xf] %v651_v34  ;;  %v652_v37 = vmax.f32 %v647_v35, 0.0  ;;  %949 = vrot.lane.b32.xlu0 %v651_v34, %s1359_s0  ;;  %846 = vst [vmem:[#allocation2 + $0x88] sm:$0xf] %v650_v36 }
 0x19e   :  { %v915_v35 = vld [vmem:[#allocation6 + $0x6] ss:$8 sm:$0xf] }
 0x19f   :  { %848 = vst [vmem:[#allocation2 + $0x40] sm:$0xf] %v652_v37  ;;  %947 = vrot.lane.b32.xlu1 %v650_v36, %s1359_s0 }
 0x1a1   :  { %999 = vrot.lane.b32.xlu0 %v649_v31, %s1360_s1 }
 0x1a3   :  { %951 = vrot.lane.b32.xlu1 %v652_v37, %s1359_s0 }
 0x1a5   :  { %1003 = vrot.lane.b32.xlu0 %v651_v34, %s1360_s1 }
 0x1a7   :  { %1001 = vrot.lane.b32.xlu1 %v650_v36, %s1360_s1 }
 0x1a9   :  { %849 = vrot.lane.b32.xlu0 %v649_v31, %s1361_s9 }
 0x1ab   :  { %1005 = vrot.lane.b32.xlu1 %v652_v37, %s1360_s1 }
 0x1ad   :  { %853 = vrot.lane.b32.xlu0 %v651_v34, %s1361_s9 }
 0x1af   :  { %851 = vrot.lane.b32.xlu1 %v650_v36, %s1361_s9 }
 0x1b1   :  { %903 = vrot.lane.b32.xlu0 %v649_v31, %s1362_s10 }
 0x1b3   :  { %855 = vrot.lane.b32.xlu1 %v652_v37, %s1361_s9 }
 0x1b5   :  { %907 = vrot.lane.b32.xlu0 %v651_v34, %s1362_s10 }
 0x1b7   :  { %905 = vrot.lane.b32.xlu1 %v650_v36, %s1362_s10 }
 0x1b9   :  { %791 = vrot.lane.b32.xlu0 %v649_v31, %s1363_s11 }
 0x1bb   :  { %909 = vrot.lane.b32.xlu1 %v652_v37, %s1362_s10 }
 0x1bd   :  { %795 = vrot.lane.b32.xlu0 %v651_v34, %s1363_s11 }
 0x1bf   :  { %793 = vrot.lane.b32.xlu1 %v650_v36, %s1363_s11 }
 0x1c1   :  { %695 = vrot.lane.b32.xlu0 %v649_v31, %s1364_s12 }
 0x1c3   :  { %797 = vrot.lane.b32.xlu1 %v652_v37, %s1363_s11 }
 0x1c5   :  { %699 = vrot.lane.b32.xlu0 %v651_v34, %s1364_s12 }
 0x1c7   :  { %697 = vrot.lane.b32.xlu1 %v650_v36, %s1364_s12 }
 0x1c9   :  { %749 = vrot.lane.b32.xlu0 %v649_v31, %s1365_s13 }
 0x1cb   :  { %701 = vrot.lane.b32.xlu1 %v652_v37, %s1364_s12 }
 0x1cd   :  { %753 = vrot.lane.b32.xlu0 %v651_v34, %s1365_s13 }
 0x1cf   :  { %751 = vrot.lane.b32.xlu1 %v650_v36, %s1365_s13 }
 0x1d1   :  { %653 = vrot.lane.b32.xlu0 %v649_v31, %s1366_s14 }
 0x1d3   :  { %755 = vrot.lane.b32.xlu1 %v652_v37, %s1365_s13 }
 0x1d5   :  { %657 = vrot.lane.b32.xlu0 %v651_v34, %s1366_s14  ;;  %v878_v34 = vrot.slane %v861_v18, %v1500_v11 }
 0x1d7   :  { %655 = vrot.lane.b32.xlu1 %v650_v36, %s1366_s14 }
 0x1d9   :  { %1065 = vperm.xlu0 %1286, %v1062_v4  }
 0x1db   :  { %659 = vrot.lane.b32.xlu1 %v652_v37, %s1366_s14 }
 0x20d   :  { %v946_v39 = vpop.permute.xlu1 %945 }
 0x20f   :  { %v950_v40 = vpop.permute.xlu0 %949 }
 0x211   :  { %v948_v43 = vpop.permute.xlu1 %947 }
 0x212   :  { %v954_v44 = vsel %vm371_vm0, %v948_v43, %v950_v40  ;;  %v955_v45 = vsel %vm371_vm0, %v946_v39, %v948_v43 }
 0x213   :  { %v1000_v46 = vpop.permute.xlu0 %999  ;;  %v979_v47 = vmul.f32 %v962_v41, %v955_v45  ;;  %v980_v48 = vmul.f32 %v966_v42, %v954_v44  ;;  %v920_v45 = vrot.slane %v915_v35, %v1502_v15 }
 0x215   :  { %v987_v52 = vrot.slane %v979_v47, 4  ;;  %v988_v53 = vrot.slane %v980_v48, 4  ;;  %v952_v54 = vpop.permute.xlu1 %951 }
 0x216   :  { %v953_v55 = vsel %vm371_vm0, %v950_v40, %v952_v54  ;;  %v956_v56 = vsel %vm371_vm0, %v952_v54, %v946_v39 }
 0x217   :  { %v1004_v57 = vpop.permute.xlu0 %1003  ;;  %995 = vst [vmem:[#allocation2 + $0x58] sm:$0xf0] %v987_v52  ;;  %996 = vst [vmem:[#allocation2 + $0x10] sm:$0xf0] %v988_v53  ;;  %v981_v58 = vmul.f32 %v970_v49, %v953_v55  ;;  %v982_v59 = vmul.f32 %v974_v50, %v956_v56 }
 0x219   :  { %v989_v62 = vrot.slane %v981_v58, 4  ;;  %v990_v63 = vrot.slane %v982_v59, 4  ;;  %v1002_v5 = vpop.permute.xlu1 %1001  ;;  %v932_v58 = vrot.slane %v915_v35, %v1500_v11  ;;  %v803_v59 = vld [vmem:[#allocation6 + $0x3] ss:$8 sm:$0xf] }
 0x21a   :  { %v1008_v6 = vsel %vm427_vm1, %v1002_v5, %v1004_v57  ;;  %v1009_v7 = vsel %vm427_vm1, %v1000_v46, %v1002_v5 }
 0x21b   :  { %v850_v8 = vpop.permute.xlu0 %849  ;;  %997 = vst [vmem:[#allocation2 + $0x98] sm:$0xf0] %v989_v62  ;;  %998 = vst [vmem:[#allocation2 + $0x60] sm:$0xf0] %v990_v63  ;;  %v1033_v12 = vmul.f32 %v1016_v60, %v1009_v7  ;;  %v1034_v13 = vmul.f32 %v1020_v61, %v1008_v6  ;;  %v812_v7 = vrot.slane %v803_v59, %v1504_v16 }
 0x21d   :  { %1037 = vst [vmem:[#allocation2 + $0x20] sm:$0xf] %v1033_v12  ;;  %1038 = vst [vmem:[#allocation2 + $0x48] sm:$0xf] %v1034_v13  ;;  %v1006_v19 = vpop.permute.xlu1 %1005 }
 0x21e   :  { %v1007_v20 = vsel %vm427_vm1, %v1004_v57, %v1006_v19  ;;  %v1010_v21 = vsel %vm427_vm1, %v1006_v19, %v1000_v46  ;;  %v924_v46 = vrot.slane %v915_v35, %v1504_v16  ;;  %v928_v57 = vrot.slane %v915_v35, %v1498_v10 }
 0x21f   :  { %v854_v22 = vpop.permute.xlu0 %853  ;;  %v1035_v23 = vmul.f32 %v1024_v14, %v1007_v20  ;;  %v1036_v24 = vmul.f32 %v1028_v17, %v1010_v21  ;;  %v808_v20 = vrot.slane %v803_v59, %v1502_v15  ;;  %v820_v21 = vrot.slane %v803_v59, %v1500_v11 }
 0x221   :  { %1039 = vst [vmem:[#allocation2 + $0x70] sm:$0xf] %v1035_v23  ;;  %1040 = vst [vmem:[#allocation2 + $0x90] sm:$0xf] %v1036_v24  ;;  %v852_v27 = vpop.permute.xlu1 %851 }
 0x222   :  { %v858_v28 = vsel %vm271_vm2, %v852_v27, %v854_v22  ;;  %v859_v29 = vsel %vm271_vm2, %v850_v8, %v852_v27  ;;  %v707_v24 = vld [vmem:[#allocation6 + $0x1] ss:$8 sm:$0xf] }
 0x223   :  { %v904_v30 = vpop.permute.xlu0 %903  ;;  %v883_v31 = vmul.f32 %v866_v25, %v859_v29  ;;  %v884_v32 = vmul.f32 %v870_v26, %v858_v28  ;;  %v716_v35 = vrot.slane %v707_v24, %v1504_v16 }
 0x224   :  { %v1059_v36 = vld [vmem:[#allocation2 + $0x48] sm:$0xf]  ;;  %v1058_v37 = vld [vmem:[#allocation2 + $0x20] sm:$0xf] }
 0x225   :  { %v891_v4 = vrot.slane %v883_v31, 4  ;;  %v892_v38 = vrot.slane %v884_v32, 4  ;;  %1265 = vmatprep.subr.msk.mxu0 %vm494_vm3, %v1059_v36  ;;  %v856_v39 = vpop.permute.xlu1 %855  ;;  %v720_v36 = vrot.slane %v707_v24, %v1498_v10 }
 0x226   :  { %v857_v40 = vsel %vm271_vm2, %v854_v22, %v856_v39  ;;  %v860_v41 = vsel %vm271_vm2, %v856_v39, %v850_v8  ;;  %1266 = vmatpush1.msk.msra.mxu0 %vm494_vm3, %v1058_v37  ;;  %v816_v8 = vrot.slane %v803_v59, %v1498_v10 }
 0x227   :  { %v908_v42 = vpop.permute.xlu0 %907  ;;  %899 = vst [vmem:[#allocation2 + $0x8] sm:$0xf0] %v891_v4  ;;  %900 = vst [vmem:[#allocation2 + $0x88] sm:$0xf0] %v892_v38  ;;  %v885_v43 = vmul.f32 %v874_v33, %v857_v40  ;;  %v886_v44 = vmul.f32 %v878_v34, %v860_v41 }
 0x228   :  { %v1061_v47 = vld [vmem:[#allocation2 + $0x90] sm:$0xf] }
 0x229   :  { %v1060_v48 = vld [vmem:[#allocation2 + $0x70] sm:$0xf]  ;;  %v893_v49 = vrot.slane %v885_v43, 4  ;;  %v894_v50 = vrot.slane %v886_v44, 4  ;;  %1268 = vmatprep.subr.msk.mxu1 %vm494_vm3, %v1061_v47  ;;  %v906_v51 = vpop.permute.xlu1 %905 }
 0x22a   :  { %v912_v52 = vsel %vm327_vm4, %v906_v51, %v908_v42  ;;  %v913_v53 = vsel %vm327_vm4, %v904_v30, %v906_v51  ;;  %1269 = vmatpush1.msk.msra.mxu1 %vm494_vm3, %v1060_v48  ;;  %v712_v48 = vrot.slane %v707_v24, %v1502_v15 }
 0x22b   :  { %v792_v54 = vpop.permute.xlu0 %791  ;;  %901 = vst [vmem:[#allocation2 + $0x28] sm:$0xf0] %v893_v49  ;;  %902 = vst [vmem:[#allocation2 + $0x40] sm:$0xf0] %v894_v50  ;;  %v937_v55 = vmul.f32 %v920_v45, %v913_v53  ;;  %v938_v56 = vmul.f32 %v924_v46, %v912_v52  ;;  %v724_v49 = vrot.slane %v707_v24, %v1500_v11 }
 0x22c   :  { %v761_v50 = vld [vmem:[#allocation6 + $0x2] ss:$8 sm:$0xf] }
 0x22d   :  { %941 = vst [vmem:[#allocation2 + $0x58] sm:$0xf] %v937_v55  ;;  %942 = vst [vmem:[#allocation2 + $0x10] sm:$0xf] %v938_v56  ;;  %v910_v60 = vpop.permute.xlu1 %909  ;;  %v770_v59 = vrot.slane %v761_v50, %v1504_v16 }
 0x22e   :  { %v911_v61 = vsel %vm327_vm4, %v908_v42, %v910_v60  ;;  %v914_v62 = vsel %vm327_vm4, %v910_v60, %v904_v30  ;;  %v1051_v31 = vld [vmem:[#allocation2 + $0x88] sm:$0xff]  ;;  %v774_v60 = vrot.slane %v761_v50, %v1498_v10 }
 0x22f   :  { %v796_v63 = vpop.permute.xlu0 %795  ;;  %v939_v5 = vmul.f32 %v928_v57, %v911_v61  ;;  %v940_v6 = vmul.f32 %v932_v58, %v914_v62  ;;  %v1050_v34 = vld [vmem:[#allocation2 + $0x8] sm:$0xff] }
 0x231   :  { %943 = vst [vmem:[#allocation2 + $0x98] sm:$0xf] %v939_v5  ;;  %944 = vst [vmem:[#allocation2 + $0x60] sm:$0xf] %v940_v6  ;;  %v794_v12 = vpop.permute.xlu1 %793 }
 0x232   :  { %v800_v13 = vsel %vm211_vm5, %v794_v12, %v796_v63  ;;  %v801_v14 = vsel %vm211_vm5, %v792_v54, %v794_v12  ;;  %v1053_v44 = vld [vmem:[#allocation2 + $0x40] sm:$0xff]  ;;  %v1052_v47 = vld [vmem:[#allocation2 + $0x28] sm:$0xff] }
 0x233   :  { %v696_v17 = vpop.permute.xlu0 %695  ;;  %v826_v18 = vmul.f32 %v812_v7, %v801_v14  ;;  %v827_v19 = vmul.f32 %v816_v8, %v800_v13  ;;  %v766_v13 = vrot.slane %v761_v50, %v1502_v15  ;;  %v778_v14 = vrot.slane %v761_v50, %v1500_v11 }
 0x234   :  { %v1055_v22 = vld [vmem:[#allocation2 + $0x10] sm:$0xff]  ;;  %v1054_v23 = vld [vmem:[#allocation2 + $0x58] sm:$0xff] }
 0x235   :  { %v834_v25 = vrot.slane %v826_v18, 4  ;;  %v835_v26 = vrot.slane %v827_v19, 4  ;;  %1107 = vmatprep.subr.mxu0 %v1055_v22  ;;  %v798_v27 = vpop.permute.xlu1 %797 }
 0x236   :  { %v799_v28 = vsel %vm211_vm5, %v796_v63, %v798_v27  ;;  %v802_v29 = vsel %vm211_vm5, %v798_v27, %v792_v54  ;;  %1108 = vmatpush1.msra.mxu0 %v1054_v23 }
 0x237   :  { %v700_v30 = vpop.permute.xlu0 %699  ;;  %842 = vst [vmem:[#allocation2 + $0x68] sm:$0xf0] %v834_v25  ;;  %843 = vst [vmem:[#allocation2 + $0x78] sm:$0xf0] %v835_v26  ;;  %v825_v32 = vmul.f32 %v808_v20, %v802_v29  ;;  %v828_v33 = vmul.f32 %v820_v21, %v799_v28  ;;  %1109 = vmatprep.subr.mxu0 %v1051_v31 }
 0x238   :  { %1110 = vmatpush1.msra.mxu0 %v1050_v34  ;;  %v1057_v37 = vld [vmem:[#allocation2 + $0x60] sm:$0xff]  ;;  %v1056_v4 = vld [vmem:[#allocation2 + $0x98] sm:$0xff] }
 0x239   :  { %v833_v38 = vrot.slane %v825_v32, 4  ;;  %v836_v39 = vrot.slane %v828_v33, 4  ;;  %1178 = vmatprep.subr.mxu1 %v1057_v37  ;;  %v698_v40 = vpop.permute.xlu1 %697 }
 0x23a   :  { %v704_v41 = vsel %vm111_vm6, %v698_v40, %v700_v30  ;;  %v705_v42 = vsel %vm111_vm6, %v696_v17, %v698_v40  ;;  %1179 = vmatpush1.msra.mxu1 %v1056_v4 }
 0x23b   :  { %v750_v43 = vpop.permute.xlu0 %749  ;;  %841 = vst [vmem:[#allocation2 + $0x30] sm:$0xf0] %v833_v38  ;;  %844 = vst [vmem:[#allocation2 + $0x80] sm:$0xf0] %v836_v39  ;;  %v730_v45 = vmul.f32 %v716_v35, %v705_v42  ;;  %v731_v46 = vmul.f32 %v720_v36, %v704_v41  ;;  %1180 = vmatprep.subr.mxu1 %v1053_v44  ;;  %v1041_v38 = vld [vmem:[%s1772_s4] sm:$0xf] }
 0x23c   :  { %1181 = vmatpush1.msra.mxu1 %v1052_v47  ;;  %s1369_s4 = smov [#allocation8]  }
 0x23d   :  { %v738_v51 = vrot.slane %v730_v45, 4  ;;  %v739_v52 = vrot.slane %v731_v46, 4  ;;  %v702_v53 = vpop.permute.xlu1 %701  ;;  %s1249_s20 = sshll.u32 %s1369_s4, 4  ;;  %s1250_s20 = int_to_ptr.vmem [resolvable:$true] %s1249_s20 }
 0x23e   :  { %v703_v54 = vsel %vm111_vm6, %v700_v30, %v702_v53  ;;  %v706_v55 = vsel %vm111_vm6, %v702_v53, %v696_v17  ;;  %v665_v17 = vld [vmem:[#allocation6] ss:$8 sm:$0xf]  ;;  %s1329_s21 = scalar_lea.vmem %s1250_s20, 256  ;;  %p1334_p11 = scmp.lt.s32.totalorder %s1250_s20, %s1250_s20 }
 0x23f   :  { %v754_v56 = vpop.permute.xlu0 %753  ;;  %746 = vst [vmem:[#allocation2 + $0x38] sm:$0xf0] %v738_v51  ;;  %747 = vst [vmem:[#allocation2 + $0x50] sm:$0xf0] %v739_v52  ;;  %v729_v57 = vmul.f32 %v712_v48, %v706_v55  ;;  %v732_v58 = vmul.f32 %v724_v49, %v703_v54  ;;  %v674_v23 = vrot.slane %v665_v17, %v1504_v16  ;;  %p1330_p10 = scmp.ne.s32.totalorder %s1250_s20, %s1329_s21  ;;  %p1335_p12 = scmp.lt.s32.totalorder %s1329_s21, %s1329_s21 }
 0x240   :  { %v678_v24 = vrot.slane %v665_v17, %v1498_v10  ;;  %v670_v31 = vrot.slane %v665_v17, %v1502_v15  ;;  %v682_v32 = vrot.slane %v665_v17, %v1500_v11 }
 0x241   :  { %v737_v61 = vrot.slane %v729_v57, 4  ;;  %v740_v62 = vrot.slane %v732_v58, 4  ;;  %v752_v63 = vpop.permute.xlu1 %751  ;;  %p1336_p13 = por %p1335_p12, %p1334_p11 }
 0x242   :  { %v758_v5 = vsel %vm167_vm7, %v752_v63, %v754_v56  ;;  %v759_v6 = vsel %vm167_vm7, %v750_v43, %v752_v63 }
 0x243   :  { %745 = vst [vmem:[#allocation2] sm:$0xf0] %v737_v61  ;;  %748 = vst [vmem:[#allocation2 + $0x18] sm:$0xf0] %v740_v62  ;;  %v784_v7 = vmul.f32 %v770_v59, %v759_v6  ;;  %v785_v8 = vmul.f32 %v774_v60, %v758_v5  ;;  %v654_v12 = vpop.permute.xlu0 %653  ;;  %p1337_p0 = pnand %p1336_p13, %p1330_p10 }
 0x245   :  { %788 = vst [vmem:[#allocation2 + $0x68] sm:$0xf] %v784_v7  ;;  %789 = vst [vmem:[#allocation2 + $0x78] sm:$0xf] %v785_v8  ;;  %v756_v18 = vpop.permute.xlu1 %755 }
 0x246   :  { %v757_v19 = vsel %vm167_vm7, %v754_v56, %v756_v18  ;;  %v760_v20 = vsel %vm167_vm7, %v756_v18, %v750_v43 }
 0x247   :  { %v783_v21 = vmul.f32 %v766_v13, %v760_v20  ;;  %v786_v22 = vmul.f32 %v778_v14, %v757_v19  ;;  %v658_v25 = vpop.permute.xlu0 %657 }
 0x249   :  { %787 = vst [vmem:[#allocation2 + $0x30] sm:$0xf] %v783_v21  ;;  %790 = vst [vmem:[#allocation2 + $0x80] sm:$0xf] %v786_v22  ;;  %v656_v26 = vpop.permute.xlu1 %655 }
 0x24a   :  { %v662_v27 = vsel %vm68_vm8, %v656_v26, %v658_v25  ;;  %v663_v28 = vsel %vm68_vm8, %v654_v12, %v656_v26 }
 0x24b   :  { %v688_v29 = vmul.f32 %v674_v23, %v663_v28  ;;  %v689_v30 = vmul.f32 %v678_v24, %v662_v27 }
 0x24c   :  { %v1047_v33 = vld [vmem:[#allocation2 + $0x68] sm:$0xff]  ;;  %v1048_v11 = vld [vmem:[#allocation2 + $0x78] sm:$0xff] }
 0x24d   :  { %692 = vst [vmem:[#allocation2 + $0x38] sm:$0xf] %v688_v29  ;;  %693 = vst [vmem:[#allocation2 + $0x50] sm:$0xf] %v689_v30  ;;  %v660_v10 = vpop.permute.xlu1 %659  ;;  %1111 = vmatprep.subr.mxu0 %v1047_v33 }
 0x24e   :  { %v661_v16 = vsel %vm68_vm8, %v658_v25, %v660_v10  ;;  %v664_v34 = vsel %vm68_vm8, %v660_v10, %v654_v12 }
 0x24f   :  { %v687_v35 = vmul.f32 %v670_v31, %v664_v34  ;;  %v690_v36 = vmul.f32 %v682_v32, %v661_v16 }
 0x250   :  { %v1046_v37 = vld [vmem:[#allocation2 + $0x30] sm:$0xff]  ;;  %v1049_v4 = vld [vmem:[#allocation2 + $0x80] sm:$0xff] }
 0x251   :  { %691 = vst [vmem:[#allocation2] sm:$0xf] %v687_v35  ;;  %694 = vst [vmem:[#allocation2 + $0x18] sm:$0xf] %v690_v36  ;;  %1112 = vmatpush1.msra.mxu0 %v1046_v37  ;;  %1182 = vmatprep.subr.mxu1 %v1049_v4 }
 0x252   :  { %1183 = vmatpush1.msra.mxu1 %v1048_v11 }
 0x254   :  { %v1043_v15 = vld [vmem:[#allocation2 + $0x38] sm:$0xff]  ;;  %v1044_v9 = vld [vmem:[#allocation2 + $0x50] sm:$0xff]  ;;  %v1066_v41 = vpop.permute.xlu0 %1065 }
 0x255   :  { %1113 = vmatprep.subr.mxu0 %v1043_v15 }
 0x258   :  { %v1042_v39 = vld [vmem:[#allocation2] sm:$0xff]  ;;  %v1045_v40 = vld [vmem:[#allocation2 + $0x18] sm:$0xff] }
 0x259   :  { %1114 = vmatpush1.msra.mxu0 %v1042_v39  ;;  %1184 = vmatprep.subr.mxu1 %v1045_v40 }
 0x25a   :  { %1267 = vmatmul.mubr.msk.f32.vlgmr.msra.gmra.mxu0 %vm490_vm9, %v1041_v38  ;;  %1185 = vmatpush1.msra.mxu1 %v1044_v9 }
 0x25b   :  { %1270 = vmatmul.mubr.msk.f32.vlgmr.msra.gmra.mxu1 %vm490_vm9, %v1041_v38 }
 0x31a   :  { %v1149_v42 = vpop.f32.mrf.mxu0 }
 0x31b   :  { %v1150_v43 = vadd.f32 %v1149_v42, %v1066_v41  ;;  %v1220_v44 = vpop.f32.mrf.mxu1 }
 0x31c   :  { %v1221_v45 = vadd.f32 %v1220_v44, %v1066_v41  ;;  %v1151_v46 = vpop.f32.mrf.mxu0 }
 0x31d   :  { %v1225_v47 = vadd.f32 %v1150_v43, %v1413_v1  ;;  %v1152_v48 = vadd.f32 %v1151_v46, %v1066_v41  ;;  %v1222_v49 = vpop.f32.mrf.mxu1 }
 0x31e   :  { %v1227_v50 = vadd.f32 %v1221_v45, %v1411_v0  ;;  %v1223_v51 = vadd.f32 %v1222_v49, %v1066_v41 }
 0x31f   :  { %v1226_v52 = vadd.f32 %v1152_v48, %v1427_v3  ;;  %v1229_v54 = vmax.f32 %v1225_v47, 0.0 }
 0x320   :  { %v1228_v53 = vadd.f32 %v1223_v51, %v1423_v2  ;;  %v1231_v56 = vmax.f32 %v1227_v50, 0.0 }
 0x321   :  { %v1230_v55 = vmax.f32 %v1226_v52, 0.0 }
 0x322   :  { %v1232_v57 = vmax.f32 %v1228_v53, 0.0 }
 0x323   :  { %v1237_v58 = vcombine.low %v1229_v54, %v1230_v55 }
 0x324   :  { %v1238_v59 = vcombine.low %v1231_v56, %v1232_v57 }
 0x325   :  { %1241 = vst [vmem:[#allocation8] sm:$0xff] %v1237_v58 }
 0x326   :  { %1242 = vst [vmem:[#allocation8 + $0x8] sm:$0xff] %v1238_v59 }
 0x327   :  { %1340 = shalt.err (!%p1337_p0)
}
 0x328   :  { %1252 = dma.vmem_to_hbm [thread:$0]  %s1250_s20, 256, %s1774_s6, [#allocation5]  }
 0x329   :  { %1353 = dma.done.wait [#allocation5], 256  }
 0x32a   :  { %1354 = vsyncadd [#allocation5], 4294967040 }
 0x32b   :  { %1256 = vsyncpa [#allocation4], 1 }
 0x32c   :  { %1257 = vsyncpa [#allocation7], 1 }
 0x32d   :  { %1258 = vsyncpa [#allocation5], 1 }

</bundles_post_ra>
